<compile_context>
chip_gen: v6e
topology: v6e:2x2x1
jax: 0.10.0
libtpu: 0.0.40
codegen_flags: <defaults>
</compile_context>

<pallas_src>
import functools

import jax
import jax.numpy as jnp
from jax import lax
from jax.experimental import pallas as pl
from jax.experimental.pallas import tpu as pltpu


def _round_up(x, m):
    return ((x + m - 1) // m) * m


def _sdpa_kernel(q_ref, k_ref, v_ref, ctx_ref, attn_ref, *, scale, lk_valid):
    """One (batch, q-tile) step: scores -> masked softmax -> context."""
    q = q_ref[0]                      # (TQ, Dp)
    k = k_ref[0]                      # (Lkp, Dp)
    v = v_ref[0]                      # (Lkp, Dvp)

    # Fold scale into q (Lk/D x fewer multiplies than scaling the score tile).
    # `if scale:` matches the PyTorch module's truthiness check (None / 0.0 -> skip).
    if scale:
        q = q * jnp.asarray(scale, dtype=q.dtype)

    # q @ k^T without an explicit transpose: contract the last dim of both
    # operands so Mosaic feeds the MXU directly (no XLU transpose of k).
    s = lax.dot_general(q, k, (((1,), (1,)), ((), ())),
                        preferred_element_type=jnp.float32)     # (TQ, Lkp)

    # Mask out zero-padded key columns so the softmax only sees real keys.
    if s.shape[-1] != lk_valid:
        col = lax.broadcasted_iota(jnp.int32, s.shape, 1)
        s = jnp.where(col < lk_valid, s, -1e30)

    # Numerically stable softmax over the key axis (PyTorch Softmax(dim=2)).
    s_max = jnp.max(s, axis=-1, keepdims=True)
    p = jnp.exp(s - s_max)
    denom = jnp.sum(p, axis=-1, keepdims=True)
    attn = p * pl.reciprocal(denom, approx=True)                # EUP reciprocal

    # TODO(synk): training-mode dropout (pltpu.prng_seed + pltpu.prng_random_bits
    # on the p tile) is not implemented; nn.Dropout is identity in eval mode.

    attn_ref[0] = attn.astype(attn_ref.dtype)
    ctx = jnp.dot(attn.astype(v.dtype), v,
                  preferred_element_type=jnp.float32)           # (TQ, Dvp)
    ctx_ref[0] = ctx.astype(ctx_ref.dtype)


def scaled_dot_product_attention(q, k, v, scale=None, dropout=0.0):
    """Pallas TPU implementation of ScaledDotProductAttention.forward (eval mode).

    q: (B, Lq, D), k: (B, Lk, D), v: (B, Lk, Dv)
      -> (context (B, Lq, Dv), attention (B, Lq, Lk))
    `dropout` is accepted for API parity; applied as identity (eval mode).
    """
    B, Lq, D = q.shape
    Bk, Lk, Dk = k.shape
    Bv, Lkv, Dv = v.shape
    assert B == Bk == Bv and D == Dk and Lk == Lkv

    out_dtype = q.dtype

    # Lane-dense padding: last dims a multiple of 128, q-tile a multiple of 8.
    Dp = _round_up(D, 128)
    Dvp = _round_up(Dv, 128)
    Lkp = _round_up(Lk, 128)

    # Query-tile size: biggest tile whose double-buffered footprint stays well
    # inside the default scoped VMEM on every generation (v7x: 64 MiB physical).
    itemsize = 4  # account in f32
    tq = min(256, _round_up(Lq, 8))
    budget = 20 << 20
    while tq > 8:
        need = 2 * itemsize * (tq * Dp + Lkp * Dp + Lkp * Dvp + tq * Dvp + tq * Lkp)
        if need <= budget:
            break
        tq //= 2
    tq = max(8, tq - tq % 8)
    Lqp = _round_up(Lq, tq)

    qp = q if (Lqp == Lq and Dp == D) else jnp.pad(q, ((0, 0), (0, Lqp - Lq), (0, Dp - D)))
    kp = k if (Lkp == Lk and Dp == D) else jnp.pad(k, ((0, 0), (0, Lkp - Lk), (0, Dp - D)))
    vp = v if (Lkp == Lk and Dvp == Dv) else jnp.pad(v, ((0, 0), (0, Lkp - Lk), (0, Dvp - Dv)))

    kernel = functools.partial(_sdpa_kernel, scale=scale, lk_valid=Lk)

    blocks_bytes = 2 * itemsize * (tq * Dp + Lkp * Dp + Lkp * Dvp + tq * Dvp + tq * Lkp)
    vmem_limit = int(min(max(blocks_bytes + (16 << 20), 32 << 20), 48 << 20))

    grid_spec = pltpu.PrefetchScalarGridSpec(
        num_scalar_prefetch=0,
        grid=(B, Lqp // tq),
        in_specs=[
            pl.BlockSpec((1, tq, Dp), lambda b, iq: (b, iq, 0)),
            pl.BlockSpec((1, Lkp, Dp), lambda b, iq: (b, 0, 0)),
            pl.BlockSpec((1, Lkp, Dvp), lambda b, iq: (b, 0, 0)),
        ],
        out_specs=[
            pl.BlockSpec((1, tq, Dvp), lambda b, iq: (b, iq, 0)),
            pl.BlockSpec((1, tq, Lkp), lambda b, iq: (b, iq, 0)),
        ],
    )

    ctx_p, attn_p = pl.pallas_call(
        kernel,
        out_shape=(
            jax.ShapeDtypeStruct((B, Lqp, Dvp), out_dtype),
            jax.ShapeDtypeStruct((B, Lqp, Lkp), out_dtype),
        ),
        grid_spec=grid_spec,
        compiler_params=pltpu.CompilerParams(
            dimension_semantics=("parallel", "parallel"),
            vmem_limit_bytes=vmem_limit,
        ),
    )(qp, kp, vp)

    # TODO(synk): for very long Lk (>= ~4K) a flash-style K-tile loop (online
    # softmax) would bound VMEM further, but the module must emit the full
    # attention matrix, so whole-Lk score tiles are kept per q tile here.

    context = ctx_p[:, :Lq, :Dv]
    attention = attn_p[:, :Lq, :Lk]
    return context, attention


def _reference(q, k, v, scale=None):
    s = jnp.einsum("bqd,bkd->bqk", q, k)
    if scale:
        s = s * scale
    attn = jax.nn.softmax(s, axis=2)
    ctx = jnp.einsum("bqk,bkd->bqd", attn, v)
    return ctx, attn


if __name__ == "__main__":
    key = jax.random.PRNGKey(0)
    kq, kk, kv = jax.random.split(key, 3)

    B, Lq, Lk, D, Dv = 2, 8, 8, 32, 32
    q = jax.random.normal(kq, (B, Lq, D), dtype=jnp.float32)
    k = jax.random.normal(kk, (B, Lk, D), dtype=jnp.float32)
    v = jax.random.normal(kv, (B, Lk, Dv), dtype=jnp.float32)
    scale = 1.0 / (D ** 0.5)

    ctx, attn = scaled_dot_product_attention(q, k, v, scale=scale, dropout=0.0)
    jax.block_until_ready((ctx, attn))

    ctx_ref, attn_ref = _reference(q, k, v, scale=scale)
    # Tolerance accounts for the approximate EUP reciprocal in the softmax normalize.
    assert jnp.allclose(ctx, ctx_ref, atol=1e-2, rtol=1e-2)
    assert jnp.allclose(attn, attn_ref, atol=1e-2, rtol=1e-2)

    print("KERNEL_OK")
</pallas_src>

<mosaic_0001>
module attributes {stable_mosaic.version = 11 : i64} {
  func.func @_sdpa_kernel(%arg0: i32, %arg1: i32, %arg2: memref<1x8x128xf32, #tpu.memory_space<vmem>>, %arg3: memref<1x128x128xf32, #tpu.memory_space<vmem>>, %arg4: memref<1x128x128xf32, #tpu.memory_space<vmem>>, %arg5: memref<1x8x128xf32, #tpu.memory_space<vmem>>, %arg6: memref<1x8x128xf32, #tpu.memory_space<vmem>>) attributes {dimension_semantics = [#tpu.dimension_semantics<parallel>, #tpu.dimension_semantics<parallel>], iteration_bounds = array<i64: 2, 1>, scalar_prefetch = 0 : i64, scratch_operands = 0 : i64, tpu.core_type = #tpu.core_type<tc>, window_params = [{transform_indices = @transform_0, window_bounds = array<i64: 1, 8, 128>}, {transform_indices = @transform_1, window_bounds = array<i64: 1, 128, 128>}, {transform_indices = @transform_2, window_bounds = array<i64: 1, 128, 128>}, {transform_indices = @transform_3, window_bounds = array<i64: 1, 8, 128>}, {transform_indices = @transform_4, window_bounds = array<i64: 1, 8, 128>}]} {
    %c0 = arith.constant 0 : index
    %c0_0 = arith.constant 0 : index
    %c0_1 = arith.constant 0 : index
    %0 = vector.load %arg2[%c0, %c0_0, %c0_1] : memref<1x8x128xf32, #tpu.memory_space<vmem>>, vector<1x8x128xf32>
    %1 = vector.shape_cast %0 : vector<1x8x128xf32> to vector<8x128xf32>
    %c0_2 = arith.constant 0 : index
    %c0_3 = arith.constant 0 : index
    %c0_4 = arith.constant 0 : index
    %2 = vector.load %arg3[%c0_2, %c0_3, %c0_4] : memref<1x128x128xf32, #tpu.memory_space<vmem>>, vector<1x128x128xf32>
    %3 = vector.shape_cast %2 : vector<1x128x128xf32> to vector<128x128xf32>
    %c0_5 = arith.constant 0 : index
    %c0_6 = arith.constant 0 : index
    %c0_7 = arith.constant 0 : index
    %4 = vector.load %arg4[%c0_5, %c0_6, %c0_7] : memref<1x128x128xf32, #tpu.memory_space<vmem>>, vector<1x128x128xf32>
    %5 = vector.shape_cast %4 : vector<1x128x128xf32> to vector<128x128xf32>
    %cst = arith.constant 0.176776692 : f32
    %6 = vector.broadcast %cst : f32 to vector<8x128xf32>
    %7 = arith.mulf %1, %6 : vector<8x128xf32>
    %cst_8 = arith.constant dense<0.000000e+00> : vector<8x128xf32>
    %8 = tpu.matmul %7, %3, %cst_8 {dimension_numbers = #tpu.dot_dimension_numbers<[1], [1], [0], [0], [0, 0, 1, 0], [], []>} : vector<8x128xf32>, vector<128x128xf32>, vector<8x128xf32> -> vector<8x128xf32>
    %9 = tpu.iota {dimensions = array<i32: 1>} : vector<8x128xi32>
    %c8_i32 = arith.constant 8 : i32
    %10 = vector.broadcast %c8_i32 : i32 to vector<8x128xi32>
    %11 = arith.cmpi slt, %9, %10 : vector<8x128xi32>
    %cst_9 = arith.constant -1.000000e+30 : f32
    %12 = vector.broadcast %cst_9 : f32 to vector<8x128xf32>
    %13 = arith.select %11, %8, %12 : vector<8x128xi1>, vector<8x128xf32>
    %cst_10 = arith.constant dense<0xFF800000> : vector<8xf32>
    %14 = vector.multi_reduction <maximumf>, %13, %cst_10 [1] : vector<8x128xf32> to vector<8xf32>
    %15 = vector.shape_cast %14 : vector<8xf32> to vector<8x1xf32>
    %16 = vector.broadcast %15 : vector<8x1xf32> to vector<8x128xf32>
    %17 = arith.subf %13, %16 : vector<8x128xf32>
    %18 = math.exp %17 : vector<8x128xf32>
    %cst_11 = arith.constant dense<0.000000e+00> : vector<8xf32>
    %19 = vector.multi_reduction <add>, %18, %cst_11 [1] : vector<8x128xf32> to vector<8xf32>
    %20 = vector.shape_cast %19 : vector<8xf32> to vector<8x1xf32>
    %21 = tpu.reciprocal %20 {approx = true} : vector<8x1xf32> -> vector<8x1xf32>
    %22 = vector.broadcast %21 : vector<8x1xf32> to vector<8x128xf32>
    %23 = arith.mulf %18, %22 : vector<8x128xf32>
    %c0_12 = arith.constant 0 : index
    %c0_13 = arith.constant 0 : index
    %c0_14 = arith.constant 0 : index
    %24 = vector.load %arg6[%c0_12, %c0_13, %c0_14] : memref<1x8x128xf32, #tpu.memory_space<vmem>>, vector<1x8x128xf32>
    %25 = vector.shape_cast %24 : vector<1x8x128xf32> to vector<8x128xf32>
    %26 = vector.shape_cast %23 : vector<8x128xf32> to vector<1x8x128xf32>
    tpu.vector_store %arg6[%c0_12, %c0_13, %c0_14], %26 {strides = array<i32>} : memref<1x8x128xf32, #tpu.memory_space<vmem>>, vector<1x8x128xf32>,
    %cst_15 = arith.constant dense<0.000000e+00> : vector<8x128xf32>
    %27 = tpu.matmul %23, %5, %cst_15 {dimension_numbers = #tpu.dot_dimension_numbers<[1], [0], [0], [1], [0, 0, 1, 1], [], []>} : vector<8x128xf32>, vector<128x128xf32>, vector<8x128xf32> -> vector<8x128xf32>
    %c0_16 = arith.constant 0 : index
    %c0_17 = arith.constant 0 : index
    %c0_18 = arith.constant 0 : index
    %28 = vector.load %arg5[%c0_16, %c0_17, %c0_18] : memref<1x8x128xf32, #tpu.memory_space<vmem>>, vector<1x8x128xf32>
    %29 = vector.shape_cast %28 : vector<1x8x128xf32> to vector<8x128xf32>
    %30 = vector.shape_cast %27 : vector<8x128xf32> to vector<1x8x128xf32>
    tpu.vector_store %arg5[%c0_16, %c0_17, %c0_18], %30 {strides = array<i32>} : memref<1x8x128xf32, #tpu.memory_space<vmem>>, vector<1x8x128xf32>,
    return
  }
  func.func @transform_0(%arg0: i32, %arg1: i32) -> (i32, i32, i32) {
    %c0_i32 = arith.constant 0 : i32
    %c0_i32_0 = arith.constant 0 : i32
    return %arg0, %arg1, %c0_i32 : i32, i32, i32
  }
  func.func @transform_1(%arg0: i32, %arg1: i32) -> (i32, i32, i32) {
    %c0_i32 = arith.constant 0 : i32
    %c0_i32_0 = arith.constant 0 : i32
    %c0_i32_1 = arith.constant 0 : i32
    return %arg0, %c0_i32, %c0_i32_0 : i32, i32, i32
  }
  func.func @transform_2(%arg0: i32, %arg1: i32) -> (i32, i32, i32) {
    %c0_i32 = arith.constant 0 : i32
    %c0_i32_0 = arith.constant 0 : i32
    %c0_i32_1 = arith.constant 0 : i32
    return %arg0, %c0_i32, %c0_i32_0 : i32, i32, i32
  }
  func.func @transform_3(%arg0: i32, %arg1: i32) -> (i32, i32, i32) {
    %c0_i32 = arith.constant 0 : i32
    %c0_i32_0 = arith.constant 0 : i32
    return %arg0, %arg1, %c0_i32 : i32, i32, i32
  }
  func.func @transform_4(%arg0: i32, %arg1: i32) -> (i32, i32, i32) {
    %c0_i32 = arith.constant 0 : i32
    %c0_i32_0 = arith.constant 0 : i32
    return %arg0, %arg1, %c0_i32 : i32, i32, i32
  }
}

</mosaic_0001>

<bundles_post_ra>
// kernel: tpu_custom_call.1
= control target key start
LH: loop header
LB: loop body
LE: loop exit
PB: predicated region body
PF: predicated region fallthrough
CT: control target
= control target key end

     0   :  { %s1456_s0 = inlined_call_operand.hbm [shape: f32[2,8,128], index: 0, kind: input, shape index: {}]   ;;  %s1457_s1 = inlined_call_operand.hbm [shape: f32[2,128,128], index: 1, kind: input, shape index: {}]   ;;  %s1458_s2 = inlined_call_operand.hbm [shape: f32[2,128,128], index: 2, kind: input, shape index: {}]   ;;  %s1459_s3 = inlined_call_operand.hbm [shape: f32[2,8,128], index: 3, kind: output, shape index: {0}]   ;;  %s1460_s4 = inlined_call_operand.hbm [shape: f32[2,8,128], index: 4, kind: output, shape index: {1}]  }
   0x1   :  { %1465 = sst [smem:[#allocation19_spill]] %s1457_s1 }
   0x2   :  { %10 = vsyncpa [#allocation3], 0 }
   0x3   :  { %12 = vsyncpa [#allocation3 + $0x1], 0 }
   0x4   :  { %13 = vsyncpa [#allocation6], 0 }
   0x5   :  { %15 = vsyncpa [#allocation6 + $0x1], 0 }
   0x6   :  { %16 = vsyncpa [#allocation4], 0 }
   0x7   :  { %18 = vsyncpa [#allocation4 + $0x1], 0 }
   0x8   :  { %19 = vsyncpa [#allocation10], 0 }
   0x9   :  { %21 = vsyncpa [#allocation10 + $0x1], 0  ;;  %s1148_s15 = smov 0   ;;  %s1150_s16 = smov 0  }
   0xa   :  { %s1152_s17 = smov 0   ;;  %s1154_s18 = smov 0  }
   0xb   :  { %s1156_s19 = smov 0   ;;  %s1158_s20 = smov 0  }
   0xc LB: > { %1466 = sst [smem:[#allocation15_spill]] %s1100_s17  ;;  %s1179_s21 = sadd.s32 4294967295, %s1112_s20   ;;  %s1112_s20 = sphi %s1158_s20, %s27_s20   ;;  %s1108_s19 = sphi %s1156_s19, %s1486_s19   ;;  %s1104_s18 = sphi %s1154_s18, %s1485_s18   ;;  %s1100_s17 = sphi %s1152_s17, %s1481_s17   ;;  %s1096_s16 = sphi %s1150_s16, %s1484_s16   ;;  %s1092_s15 = sphi %s1148_s15, %s1483_s15  }
   0xd   : > { %s700_s22 = sadd.s32 4294967294, %s1112_s20   ;;  %s39_s23 = sadd.s32 1, %s1108_s19 }
   0xe   : > { %s48_s24 = sadd.s32 1, %s1100_s17  ;;  %p41_p0 = scmp.ge.s32.totalorder %s39_s23, 2 }
   0xf   : > { %p55_p1 = scmp.ne.s32.totalorder %s1100_s17, %s1096_s16  ;;  %p56_p2 = scmp.eq.s32.totalorder %s1112_s20, 0 }
  0x10   : > { %p61_p3 = scmp.ne.s32.totalorder %s1096_s16, %s1092_s15  ;;  %s1488_s23 = smov (%p41_p0, %s39_s23), 0 }
  0x11   : > { %1467 = sst [smem:[#allocation16_spill]] %s1488_s23  ;;  %p1191_p4 = por %p56_p2, %p55_p1 }
  0x12   : > { %p62_p5 = scmp.eq.s32.totalorder %s1179_s21, 0  ;;  %s43_s26 = ssub.s32 %s1108_s19, %s1488_s23 }
  0x13   : > { %p139_p6 = scmp.eq.s32.totalorder %s1179_s21, 1  ;;  %p46_p7 = scmp.eq.s32.totalorder %s43_s26, 0 }
  0x14   : > { %p1199_p8 = por %p62_p5, %p61_p3  ;;  %p145_p10 = scmp.eq.s32.totalorder %s700_s22, 1 }
  0x15   : > { %p1203_p9 = por %p139_p6, %p55_p1  ;;  %p856_p13 = scmp.lt.s32.totalorder %s1112_s20, 2 }
  0x16   : > { %s1208_s29 = scalar_select %p46_p7, %s1100_s17, %s48_s24  }
  0x17   : > { %p1210_p11 = por %p145_p10, %p61_p3  ;;  %s1217_s5 = sand.u32 1, %s1100_s17  }
  0x18   : > { %1471 = sst [smem:[#allocation17_spill]] %s1208_s29  ;;  %s212_s6 = sand.u32 1, %s1112_s20  }
  0x19   : > { %s1472_s30 = scalar_select %p1210_p11, 1, 0 }
  0x1a   : > { %s705_s7 = sshll.u32 %s1217_s5, 7  ;;  %p1223_p0 = pnand %p856_p13, %p1191_p4 }
  0x1b   : > { %1473 = sst [smem:[#allocation18_spill]] %s1472_s30  ;;  %s723_s9 = sshll.u32 %s1108_s19, 11 }
  0x1c   : > { %s1475_s1 = sld [smem:[#allocation19_spill]]  ;;  %s216_s13 = scalar_lea.vmem [#allocation5], %s705_s7 }
  0x1d   : > { %s223_s14 = sshll.u32 %s216_s13, 4  ;;  %s1233_s22 = scalar_lea.sflag [#allocation6], %s212_s6  ;;  %s224_s14 = int_to_ptr.vmem [resolvable:$true] %s223_s14 }
  0x1e   : > { %p916_p1 = pneg %p1223_p0  ;;  %s927_s24 = scalar_lea.vmem %s224_s14, 2048 }
  0x1f   : > { %p928_p2 = scmp.ne.s32.totalorder %s224_s14, %s927_s24  ;;  %s1114_s25 = smov [#allocation5]  }
  0x20   : > { %s932_s26 = sshll.u32 %s1114_s25, 4  ;;  %s933_s26 = int_to_ptr.vmem [resolvable:$false] %s932_s26 }
  0x21   : > { %p930_p3 = pnand %p928_p2, %p916_p1  ;;  %s934_s23 = scalar_lea.vmem %s933_s26, 4096 }
  0x22   : > { %s222_s12 = scalar_lea.hbm %s1475_s1, %s723_s9  ;;  %p935_p5 = scmp.lt.s32.totalorder %s224_s14, %s933_s26 }
  0x23   : > { %p931_p4 = pneg %p930_p3  ;;  %p936_p6 = scmp.lt.s32.totalorder %s934_s23, %s927_s24 }
  0x25   : > { %p937_p7 = por %p936_p6, %p935_p5 }
  0x27   : > { %p938_p10 = pnand %p937_p7, %p931_p4 }
  0x29   : > { %941 = shalt.err (!%p938_p10)
}
  0x2a   : > { %s1464_s10 = smov 128   ;;  %s1116_s6 = smov 8  }
  0x2b   : > { %845 = dma.hbm_to_vmem [thread:$0]  (!%p1223_p0), %s222_s12, 2048, %s224_s14, %s1233_s22, %s1464_s10, %s1464_s10, %s1116_s6  }
  0x2c   : > { %s1249_s13 = scalar_lea.hbm %s1458_s2, %s723_s9  ;;  %p711_p13 = scmp.ge.s32.totalorder %s1112_s20, 1 }
  0x2d   : > { %s237_s24 = scalar_lea.vmem [#allocation7], %s705_s7  ;;  %p252_p2 = scmp.lt.s32.totalorder %s1112_s20, 3 }
  0x2e   : > { %s244_s25 = sshll.u32 %s237_s24, 4  ;;  %s703_s1 = sshll.u32 %s1217_s5, 3  ;;  %s1264_s25 = int_to_ptr.vmem [resolvable:$true] %s244_s25 }
  0x2f   : > { %p1255_p3 = pnand %p711_p13, %p252_p2  ;;  %s704_s29 = sshll.u32 %s1108_s19, 7 }
  0x30   : > { %s203_s12 = scalar_lea.hbm %s1456_s0, %s704_s29  ;;  %s197_s9 = scalar_lea.vmem [#allocation2], %s703_s1 }
  0x31   : > { %s205_s14 = sshll.u32 %s197_s9, 4  ;;  %s194_s11 = scalar_lea.sflag [#allocation3], %s1217_s5  ;;  %s206_s14 = int_to_ptr.vmem [resolvable:$true] %s205_s14 }
  0x32   : > { %s955_s23 = scalar_lea.vmem %s206_s14, 128  ;;  %s1117_s7 = smov [#allocation2]  }
  0x33   : > { %p956_p4 = scmp.ne.s32.totalorder %s206_s14, %s955_s23  ;;  %s960_s24 = sshll.u32 %s1117_s7, 4  ;;  %s961_s24 = int_to_ptr.vmem [resolvable:$false] %s960_s24 }
  0x34   : > { %s962_s10 = scalar_lea.vmem %s961_s24, 256  ;;  %p963_p7 = scmp.lt.s32.totalorder %s206_s14, %s961_s24 }
  0x35   : > { %p958_p5 = pnand %p956_p4, %p916_p1  ;;  %p964_p10 = scmp.lt.s32.totalorder %s962_s10, %s955_s23 }
  0x37   : > { %p959_p6 = pneg %p958_p5  ;;  %p965_p13 = por %p964_p10, %p963_p7 }
  0x39   : > { %p966_p2 = pnand %p965_p13, %p959_p6 }
  0x3b   : > { %969 = shalt.err (!%p966_p2)
}
  0x3c   : > { %842 = dma.hbm_to_vmem [thread:$0]  (!%p1223_p0), %s203_s12, 128, %s206_s14, %s194_s11  }
  0x3d   : > { %s983_s1 = scalar_lea.vmem %s1264_s25, 2048  ;;  %s1118_s17 = smov [#allocation7]  }
  0x3e   : > { %p984_p12 = scmp.ne.s32.totalorder %s1264_s25, %s983_s1  ;;  %s988_s29 = sshll.u32 %s1118_s17, 4  ;;  %s989_s29 = int_to_ptr.vmem [resolvable:$false] %s988_s29 }
  0x3f   : > { %s990_s30 = scalar_lea.vmem %s989_s29, 4096  ;;  %p991_p7 = scmp.lt.s32.totalorder %s1264_s25, %s989_s29 }
  0x40   : > { %p986_p4 = pnand %p984_p12, %p916_p1  ;;  %p992_p6 = scmp.lt.s32.totalorder %s990_s30, %s983_s1 }
  0x42   : > { %p987_p5 = pneg %p986_p4  ;;  %p993_p10 = por %p992_p6, %p991_p7 }
  0x44   : > { %p994_p13 = pnand %p993_p10, %p987_p5 }
  0x46   : > { %997 = shalt.err (!%p994_p13)
}
  0x47   : > { %s1477_s5 = smov 128   ;;  %256 = sbr.rel (%p1255_p3) target bundleno = 857 (0x359), region = 32 }
  0x48   : > { %848 = dma.hbm_to_vmem [thread:$0]  (!%p1223_p0), %s1249_s13, 2048, %s1264_s25, %s1233_s22, %s1477_s5, %s1477_s5, %s1116_s6  }
  0x49   : > { %s1289_s10 = sand.u32 (!%p1255_p3), 1, %s1096_s16  }
  0x4a   : > { %s1292_s12 = sshll.u32 (!%p1255_p3), %s1289_s10, 3  ;;  %s259_s8 = scalar_lea.sflag (!%p1255_p3), [#allocation3], %s1289_s10 }
  0x4b   : > { %s262_s9 = scalar_lea.vmem (!%p1255_p3), [#allocation2], %s1292_s12 }
  0x4c   : > { %1075 = dma.done.wait (%p1199_p8), %s259_s8, 128  }
  0x4d   : > { %1077 = vsyncadd (%p1199_p8), %s259_s8, 4294967168  ;;  %s267_s22 = sand.u32 1, %s1179_s21   ;;  %s713_s6 = sshll.u32 %s1289_s10, 7 }
  0x4e   : > { %s268_s13 = scalar_lea.sflag [#allocation6], %s267_s22  ;;  %s1304_s25 = scalar_lea.vmem [#allocation5], %s713_s6 }
  0x4f   : > { %1079 = dma.done.wait (%p1199_p8), %s268_s13, 4096  }
  0x50   : > { %1081 = vsyncadd (%p1199_p8), %s268_s13, 4294963200  ;;  %v1119_v0 = vmov 0.0   ;;  %vm1120_vm0 = vmmov 0   ;;  %v336_v1 = vld [vmem:[%s1304_s25 + $0x78] sm:$0xff]  ;;  %v335_v2 = vld [vmem:[%s1304_s25 + $0x70] sm:$0xff]  ;;  %v424_v19 = vlaneseq  ;;  %s1349_s21 = scalar_lea.vmem [#allocation7], %s713_s6 }
  0x51   : > { %759 = vmatprep.subr.mxu0 %v1119_v0  ;;  %791 = vmatprep.mubr.msk.f32.mxu0 %vm1120_vm0, %v1119_v0  ;;  %v334_v3 = vld [vmem:[%s1304_s25 + $0x68] sm:$0xff]  ;;  %v333_v4 = vld [vmem:[%s1304_s25 + $0x60] sm:$0xff]  ;;  %v332_v5 = vld [vmem:[%s1304_s25 + $0x58] sm:$0xff]  ;;  %s319_s27 = scalar_lea.vmem [#allocation9], %s1292_s12  ;;  %s719_s26 = sshll.u32 %s1104_s18, 7 }
  0x52   : > { %794 = vmatprep.subr.mxu1 %v1119_v0  ;;  %826 = vmatprep.mubr.msk.f32.mxu1 %vm1120_vm0, %v1119_v0  ;;  %v331_v6 = vld [vmem:[%s1304_s25 + $0x50] sm:$0xff]  ;;  %v330_v7 = vld [vmem:[%s1304_s25 + $0x48] sm:$0xff]  ;;  %v329_v8 = vld [vmem:[%s1304_s25 + $0x40] sm:$0xff]  ;;  %v425_v20 = vand.u32 127, %v424_v19  ;;  %s541_s23 = scalar_lea.hbm %s1460_s4, %s719_s26  ;;  %s543_s7 = sshll.u32 %s319_s27, 4  ;;  %s544_s7 = int_to_ptr.vmem [resolvable:$true] %s543_s7 }
  0x53   : > { %760 = vmatpush3.xpose.msra.mxu0 %v336_v1  ;;  %v328_v9 = vld [vmem:[%s1304_s25 + $0x38] sm:$0xff]  ;;  %v327_v10 = vld [vmem:[%s1304_s25 + $0x30] sm:$0xff]  ;;  %v326_v11 = vld [vmem:[%s1304_s25 + $0x28] sm:$0xff]  ;;  %s515_s24 = scalar_lea.sflag [#allocation10], %s1289_s10  ;;  %s998_s1 = scalar_lea.vmem %s544_s7, 128 }
  0x54   : > { %761 = vmatprep.subr.mxu0 %v1119_v0  ;;  %v325_v12 = vld [vmem:[%s1304_s25 + $0x20] sm:$0xff]  ;;  %v324_v13 = vld [vmem:[%s1304_s25 + $0x18] sm:$0xff]  ;;  %v323_v14 = vld [vmem:[%s1304_s25 + $0x10] sm:$0xff]  ;;  %vm426_vm1 = vcmp.lt.s32.totalorder %v425_v20, 8  ;;  %p999_p8 = scmp.ne.s32.totalorder %s544_s7, %s998_s1  ;;  %s1121_s17 = smov [#allocation9]  }
  0x55   : > { %v322_v15 = vld [vmem:[%s1304_s25 + $0x8] sm:$0xff]  ;;  %v320_v16 = vld [vmem:[%s262_s9] sm:$0xff]  ;;  %v321_v17 = vld [vmem:[%s1304_s25] sm:$0xff]  ;;  %s1002_s29 = sshll.u32 %s1121_s17, 4  ;;  %s1003_s29 = int_to_ptr.vmem [resolvable:$false] %s1002_s29 }
  0x56   : > { %v353_v18 = vmul.f32 0.17677669, %v320_v16  ;;  %v352_v24 = vld [vmem:[%s1349_s21 + $0x78] sm:$0xff]  ;;  %v351_v25 = vld [vmem:[%s1349_s21 + $0x70] sm:$0xff]  ;;  %v350_v26 = vld [vmem:[%s1349_s21 + $0x68] sm:$0xff]  ;;  %p1000_p12 = pnand %p999_p8, %p1203_p9  ;;  %s1004_s30 = scalar_lea.vmem %s1003_s29, 256 }
  0x57   : > { %762 = vmatpush3.xpose.msra.mxu0 %v335_v2  ;;  %795 = vmatpush3.msra.mxu1 %v352_v24  ;;  %v349_v27 = vld [vmem:[%s1349_s21 + $0x60] sm:$0xff]  ;;  %v348_v28 = vld [vmem:[%s1349_s21 + $0x58] sm:$0xff]  ;;  %v347_v29 = vld [vmem:[%s1349_s21 + $0x50] sm:$0xff]  ;;  %p1005_p1 = scmp.lt.s32.totalorder %s544_s7, %s1003_s29  ;;  %p1006_p3 = scmp.lt.s32.totalorder %s1004_s30, %s998_s1 }
  0x58   : > { %763 = vmatprep.subr.mxu0 %v1119_v0  ;;  %796 = vmatprep.subr.mxu1 %v1119_v0  ;;  %v346_v30 = vld [vmem:[%s1349_s21 + $0x48] sm:$0xff]  ;;  %v345_v31 = vld [vmem:[%s1349_s21 + $0x40] sm:$0xff]  ;;  %v344_v36 = vld [vmem:[%s1349_s21 + $0x38] sm:$0xff]  ;;  %p1001_p0 = pneg %p1000_p12 }
  0x59   : > { %797 = vmatpush3.msra.mxu1 %v351_v25  ;;  %v343_v37 = vld [vmem:[%s1349_s21 + $0x30] sm:$0xff]  ;;  %v342_v38 = vld [vmem:[%s1349_s21 + $0x28] sm:$0xff]  ;;  %v341_v39 = vld [vmem:[%s1349_s21 + $0x20] sm:$0xff]  ;;  %p1007_p2 = por %p1006_p3, %p1005_p1 }
  0x5a   : > { %798 = vmatprep.subr.mxu1 %v1119_v0  ;;  %v340_v40 = vld [vmem:[%s1349_s21 + $0x18] sm:$0xff]  ;;  %v339_v41 = vld [vmem:[%s1349_s21 + $0x10] sm:$0xff]  ;;  %v338_v42 = vld [vmem:[%s1349_s21 + $0x8] sm:$0xff] }
  0x5b   : > { %764 = vmatpush3.xpose.msra.mxu0 %v334_v3  ;;  %799 = vmatpush3.msra.mxu1 %v350_v26  ;;  %v337_v43 = vld [vmem:[%s1349_s21] sm:$0xff]  ;;  %p1008_p4 = pnand %p1007_p2, %p1001_p0 }
  0x5c   : > { %765 = vmatprep.subr.mxu0 %v1119_v0  ;;  %800 = vmatprep.subr.mxu1 %v1119_v0 }
  0x5d   : > { %801 = vmatpush3.msra.mxu1 %v349_v27 }
  0x5e   : > { %802 = vmatprep.subr.mxu1 %v1119_v0 }
  0x5f   : > { %766 = vmatpush3.xpose.msra.mxu0 %v333_v4  ;;  %803 = vmatpush3.msra.mxu1 %v348_v28 }
  0x60   : > { %767 = vmatprep.subr.mxu0 %v1119_v0  ;;  %804 = vmatprep.subr.mxu1 %v1119_v0 }
  0x61   : > { %805 = vmatpush3.msra.mxu1 %v347_v29 }
  0x62   : > { %806 = vmatprep.subr.mxu1 %v1119_v0 }
  0x63   : > { %768 = vmatpush3.xpose.msra.mxu0 %v332_v5  ;;  %807 = vmatpush3.msra.mxu1 %v346_v30 }
  0x64   : > { %769 = vmatprep.subr.mxu0 %v1119_v0  ;;  %808 = vmatprep.subr.mxu1 %v1119_v0 }
  0x65   : > { %809 = vmatpush3.msra.mxu1 %v345_v31 }
  0x66   : > { %810 = vmatprep.subr.mxu1 %v1119_v0 }
  0x67   : > { %770 = vmatpush3.xpose.msra.mxu0 %v331_v6  ;;  %811 = vmatpush3.msra.mxu1 %v344_v36 }
  0x68   : > { %771 = vmatprep.subr.mxu0 %v1119_v0  ;;  %812 = vmatprep.subr.mxu1 %v1119_v0 }
  0x69   : > { %813 = vmatpush3.msra.mxu1 %v343_v37 }
  0x6a   : > { %814 = vmatprep.subr.mxu1 %v1119_v0 }
  0x6b   : > { %772 = vmatpush3.xpose.msra.mxu0 %v330_v7  ;;  %815 = vmatpush3.msra.mxu1 %v342_v38 }
  0x6c   : > { %773 = vmatprep.subr.mxu0 %v1119_v0  ;;  %816 = vmatprep.subr.mxu1 %v1119_v0 }
  0x6d   : > { %817 = vmatpush3.msra.mxu1 %v341_v39 }
  0x6e   : > { %818 = vmatprep.subr.mxu1 %v1119_v0 }
  0x6f   : > { %774 = vmatpush3.xpose.msra.mxu0 %v329_v8  ;;  %819 = vmatpush3.msra.mxu1 %v340_v40 }
  0x70   : > { %775 = vmatprep.subr.mxu0 %v1119_v0  ;;  %820 = vmatprep.subr.mxu1 %v1119_v0 }
  0x71   : > { %821 = vmatpush3.msra.mxu1 %v339_v41 }
  0x72   : > { %822 = vmatprep.subr.mxu1 %v1119_v0 }
  0x73   : > { %776 = vmatpush3.xpose.msra.mxu0 %v328_v9  ;;  %823 = vmatpush3.msra.mxu1 %v338_v42 }
  0x74   : > { %777 = vmatprep.subr.mxu0 %v1119_v0  ;;  %824 = vmatprep.subr.mxu1 %v1119_v0 }
  0x75   : > { %825 = vmatpush3.msra.mxu1 %v337_v43 }
  0x77   : > { %778 = vmatpush3.xpose.msra.mxu0 %v327_v10 }
  0x78   : > { %779 = vmatprep.subr.mxu0 %v1119_v0 }
  0x7b   : > { %780 = vmatpush3.xpose.msra.mxu0 %v326_v11 }
  0x7c   : > { %781 = vmatprep.subr.mxu0 %v1119_v0 }
  0x7f   : > { %782 = vmatpush3.xpose.msra.mxu0 %v325_v12 }
  0x80   : > { %783 = vmatprep.subr.mxu0 %v1119_v0 }
  0x83   : > { %784 = vmatpush3.xpose.msra.mxu0 %v324_v13 }
  0x84   : > { %785 = vmatprep.subr.mxu0 %v1119_v0 }
  0x87   : > { %786 = vmatpush3.xpose.msra.mxu0 %v323_v14 }
  0x88   : > { %787 = vmatprep.subr.mxu0 %v1119_v0 }
  0x8b   : > { %788 = vmatpush3.xpose.msra.mxu0 %v322_v15 }
  0x8c   : > { %789 = vmatprep.subr.mxu0 %v1119_v0 }
  0x8f   : > { %790 = vmatpush3.xpose.msra.mxu0 %v321_v17 }
  0x92   : > { %792 = vmatmul.mubr.f32.vlgmr.msra.gmra.mxu0 %v353_v18 }
 0x152   : > { %v420_v21 = vpop.f32.mrf.mxu0 }
 0x153   : > { %v427_v22 = vsel %vm426_vm1, %v420_v21, -1e+30 }
 0x154   : > { %428 = vmax.xlane.f32.xlu0 %v427_v22  ;;  %v793_v23 = vpop.f32.mrf.mxu0 }
 0x1dd   : > { %v429_v32 = vpop.xlane.xlu0 %428 }
 0x1de   : > { %v430_v33 = vsub.f32 %v427_v22, %v429_v32 }
 0x1e0   : > { %v431_v34 = vmul.f32 1.442695, %v430_v33 }
 0x1e2   : > { %910 = vpow2.f32 %v431_v34 }
 0x1ef   : > { %v911_v35 = vpop.eup %910 }
 0x1f0   : > { %433 = vadd.xlane.f32.xlu0 %v911_v35 }
 0x279   : > { %v434_v44 = vpop.xlane.xlu0 %433 }
 0x27a   : > { %912 = vrcp.f32 %v434_v44 }
 0x287   : > { %v913_v45 = vpop.eup %912 }
 0x288   : > { %v436_v46 = vmul.f32 %v913_v45, %v911_v35 }
 0x28a   : > { %827 = vmatmul.mubr.f32.vlgmr.msra.gmra.mxu1 %v436_v46  ;;  %437 = vst [vmem:[%s319_s27] sm:$0xff] %v436_v46 }
 0x28b   : > { %1011 = shalt.err (!%p1008_p4)
}
 0x28c   : > { %s1012_s5 = scalar_lea.hbm %s541_s23, 128  ;;  %s1016_s22 = scalar_lea.hbm %s1460_s4, 256 }
 0x28d   : > { %p1013_p5 = scmp.ne.s32.totalorder %s541_s23, %s1012_s5  ;;  %p1017_p10 = scmp.lt.s32.totalorder %s541_s23, %s1460_s4 }
 0x28e   : > { %p1018_p13 = scmp.lt.s32.totalorder %s1016_s22, %s1012_s5 }
 0x28f   : > { %p1014_p7 = pnand %p1013_p5, %p1203_p9 }
 0x290   : > { %p1019_p8 = por %p1018_p13, %p1017_p10 }
 0x291   : > { %p1015_p6 = pneg %p1014_p7 }
 0x293   : > { %p1020_p12 = pnand %p1019_p8, %p1015_p6 }
 0x295   : > { %1023 = shalt.err (!%p1020_p12)
}
 0x296   : > { %836 = dma.vmem_to_hbm [thread:$0]  (%p1203_p9), %s544_s7, 128, %s541_s23, %s515_s24  }
 0x297   : > { %s312_s25 = scalar_lea.vmem [#allocation8], %s1292_s12  ;;  %s1410_s11 = scalar_lea.hbm %s1459_s3, %s719_s26 }
 0x298   : > { %s529_s21 = sshll.u32 %s312_s25, 4  ;;  %s510_s1 = scalar_lea.sflag [#allocation4], %s1289_s10  ;;  %s1403_s21 = int_to_ptr.vmem [resolvable:$true] %s529_s21 }
 0x299   : > { %s1024_s17 = scalar_lea.vmem %s1403_s21, 128  ;;  %s1122_s12 = smov [#allocation8]  }
 0x29a   : > { %p1025_p0 = scmp.ne.s32.totalorder %s1403_s21, %s1024_s17  ;;  %s1028_s23 = sshll.u32 %s1122_s12, 4  ;;  %s1029_s23 = int_to_ptr.vmem [resolvable:$false] %s1028_s23 }
 0x29b   : > { %s1030_s18 = scalar_lea.vmem %s1029_s23, 256  ;;  %p1031_p2 = scmp.lt.s32.totalorder %s1403_s21, %s1029_s23 }
 0x29c   : > { %p1026_p1 = pnand %p1025_p0, %p1203_p9  ;;  %p1032_p4 = scmp.lt.s32.totalorder %s1030_s18, %s1024_s17 }
 0x29e   : > { %p1027_p3 = pneg %p1026_p1  ;;  %p1033_p5 = por %p1032_p4, %p1031_p2 }
 0x2a0   : > { %p1034_p7 = pnand %p1033_p5, %p1027_p3 }
 0x34a   : > { %v504_v47 = vpop.f32.mrf.mxu1 }
 0x34b   : > { %508 = vst [vmem:[%s312_s25] sm:$0xff] %v504_v47 }
 0x34c   : > { %v828_v48 = vpop.f32.mrf.mxu1 }
 0x34d   : > { %1037 = shalt.err (!%p1034_p7)
}
 0x34e   : > { %s1038_s26 = scalar_lea.hbm %s1410_s11, 128  ;;  %s1042_s24 = scalar_lea.hbm %s1459_s3, 256 }
 0x34f   : > { %p1039_p6 = scmp.ne.s32.totalorder %s1410_s11, %s1038_s26  ;;  %p1043_p8 = scmp.lt.s32.totalorder %s1410_s11, %s1459_s3 }
 0x350   : > { %p1044_p12 = scmp.lt.s32.totalorder %s1042_s24, %s1038_s26 }
 0x351   : > { %p1040_p10 = pnand %p1039_p6, %p1203_p9 }
 0x352   : > { %p1045_p0 = por %p1044_p12, %p1043_p8 }
 0x353   : > { %p1041_p13 = pneg %p1040_p10 }
 0x355   : > { %p1046_p1 = pnand %p1045_p0, %p1041_p13 }
 0x357   : > { %1049 = shalt.err (!%p1046_p1)
}
 0x358   : > { %835 = dma.vmem_to_hbm [thread:$0]  (%p1203_p9), %s1403_s21, 128, %s1410_s11, %s510_s1  }
 0x359 PF: > { %s555_s8 = sand.u32 1, %s1092_s15   ;;  %p1479_p3 = scmp.ge.s32.totalorder %s1112_s20, 2 }
 0x35a   : > { %s556_s9 = scalar_lea.sflag [#allocation4], %s555_s8 }
 0x35b   : > { %p850_p2 = pnand %p1479_p3, %p1210_p11 }
 0x35d   : > { %p851_p4 = pneg %p850_p2 }
 0x35f   : > { %1083 = dma.done.wait (%p851_p4), %s556_s9, 128  }
 0x360   : > { %1085 = vsyncadd (%p851_p4), %s556_s9, 4294967168  ;;  %s565_s22 = scalar_lea.sflag [#allocation10], %s555_s8 }
 0x361   : > { %1087 = dma.done.wait (%p851_p4), %s565_s22, 128  }
 0x362   : > { %1089 = vsyncadd (%p851_p4), %s565_s22, 4294967168  ;;  %s27_s20 = sadd.s32 1, %s1112_s20   ;;  %s1480_s28 = sld [smem:[#allocation15_spill]] }
 0x363   : > { %p24_p5 = scmp.ge.s32.totalorder %s27_s20, 4   ;;  %s1481_s17 = sld [smem:[#allocation17_spill]] }
 0x364   : > { %s1482_s6 = sld [smem:[#allocation16_spill]]  ;;  %s1483_s15 = smov %s1096_s16 }
 0x365   : > { %s1485_s18 = smov %s1108_s19 }
 0x366   :  { %26 = sbr.rel (!%p24_p5) target bundleno = 12 (0xc), region = 118 }
 0x368   : > { %s1484_s16 = smov %s1480_s28 }
 0x36a   : > { %s1486_s19 = smov %s1482_s6 }
 0x36b   :  { %570 = vsyncpa [#allocation3], 1 }
 0x36c   :  { %572 = vsyncpa [#allocation3 + $0x1], 1 }
 0x36d   :  { %573 = vsyncpa [#allocation6], 1 }
 0x36e   :  { %575 = vsyncpa [#allocation6 + $0x1], 1 }
 0x36f   :  { %576 = vsyncpa [#allocation4], 1 }
 0x370   :  { %578 = vsyncpa [#allocation4 + $0x1], 1 }
 0x371   :  { %579 = vsyncpa [#allocation10], 1 }
 0x372   :  { %581 = vsyncpa [#allocation10 + $0x1], 1 }

</bundles_post_ra>
